<compile_context>
chip_gen: v5e
topology: v5e:2x2
jax: 0.10.0
libtpu: 0.0.40
codegen_flags: <defaults>
</compile_context>

<pallas_src>
import functools

import jax
import jax.numpy as jnp
from jax.experimental import pallas as pl
from jax.experimental.pallas import tpu as pltpu


def _round_up(x, m):
    return ((x + m - 1) // m) * m


def _ressl_kernel(q_ref, k_ref, o_ref, *, inv_t_student, inv_t_teacher,
                  n_rows, tile_rows, needs_mask):
    q = q_ref[...]
    k = k_ref[...]

    # Max-subtract in the input dtype (bf16 stays bf16 through max/sub), then
    # a single f32 upcast fused with the temperature scale feeds exp/log.
    q_shift = (q - jnp.max(q, axis=1, keepdims=True)).astype(jnp.float32)
    q_shift = q_shift * jnp.float32(inv_t_student)
    k_shift = (k - jnp.max(k, axis=1, keepdims=True)).astype(jnp.float32)
    k_shift = k_shift * jnp.float32(inv_t_teacher)

    # Student log-softmax over the class (lane) axis.
    q_lse = jnp.log(jnp.sum(jnp.exp(q_shift), axis=1, keepdims=True))
    log_p_q = q_shift - q_lse                                   # (T, C)

    # Teacher softmax folded into two lane reductions (no full-tile p_k).
    k_exp = jnp.exp(k_shift)                                    # (T, C)
    den = jnp.sum(k_exp, axis=1, keepdims=True)                 # (T, 1)
    num = jnp.sum(k_exp * log_p_q, axis=1, keepdims=True)       # (T, 1)
    # Exact reciprocal keeps the 1e-5 tolerance; it is per-row, hence cheap.
    row_val = num * pl.reciprocal(den, approx=False)            # (T, 1)

    if needs_mask:
        # Ragged tail tile only: the padded rows hold garbage, but all
        # reductions above are per-row, so one select on the per-row result
        # is sufficient (where is a select, not a multiply).
        i = pl.program_id(0)
        row_ids = i * tile_rows + jax.lax.broadcasted_iota(
            jnp.int32, (tile_rows, 1), 0)
        row_val = jnp.where(row_ids < n_rows, row_val, 0.0)

    # Per-tile partial sum written as one lane-dense (8, 128) block
    # (independent of C); the wrapper reads element [0, 0] of each block.
    tile_sum = jnp.sum(row_val, axis=0, keepdims=True)          # (1, 1)
    o_ref[...] = jnp.broadcast_to(tile_sum, (8, 128))


def _pick_tile_rows(c, itemsize, vmem_cap, sub):
    """Largest batch tile that comfortably fits VMEM.

    Working set per row: 2 inputs x 2 pipeline buffers in the input dtype
    plus ~6 live full-tile f32 temporaries in the softmax body.  Budget 45%
    of physical VMEM so the thin-margin 64 MiB parts (v7x) stay spill-free.
    """
    budget = int(vmem_cap * 0.45)
    bytes_per_row = c * (4 * itemsize + 6 * 4)
    tr = budget // max(bytes_per_row, 1)
    tr = max(sub, (tr // sub) * sub)
    return min(tr, 4096)


def ressl_loss(logits_q, logits_k, t_student=0.1, t_teacher=0.04, *,
               tile_rows=None):
    assert logits_q.shape == logits_k.shape
    assert logits_q.ndim == 2
    n, c = logits_q.shape

    it_q = jnp.dtype(logits_q.dtype).itemsize
    it_k = jnp.dtype(logits_k.dtype).itemsize
    itemsize = max(it_q, it_k)
    # Sublane-packing minimum: 8 rows for 4-byte, 16 for 2-byte, 32 for 1-byte.
    sub = max(8, 32 // min(it_q, it_k))

    try:
        vmem_cap = int(pltpu.get_tpu_info().vmem_capacity_bytes)
    except Exception:
        vmem_cap = 64 * 1024 * 1024    # conservative default (v7x per-core VMEM)

    if tile_rows is None:
        tile_rows = _pick_tile_rows(c, itemsize, vmem_cap, sub)
        # Aim for >= ~8 grid steps (keeps both v7x TensorCores busy and gives
        # the pipeline something to overlap) but never drop below 512 rows --
        # streaming kernels only approach the HBM roofline with big tiles.
        target = max(_round_up(pl.cdiv(n, 8), sub), 512)
        tile_rows = min(tile_rows, target)
    tile_rows = int(tile_rows)

    if tile_rows >= n:
        tile_rows = n                  # single full-batch block (full-dim, always legal)
    else:
        assert tile_rows % sub == 0, (
            f"tile_rows must be a multiple of {sub} for "
            f"{logits_q.dtype}/{logits_k.dtype} inputs")

    num_tiles = pl.cdiv(n, tile_rows)
    needs_mask = (n % tile_rows) != 0

    kernel = functools.partial(
        _ressl_kernel,
        inv_t_student=float(1.0 / t_student),
        inv_t_teacher=float(1.0 / t_teacher),
        n_rows=int(n),
        tile_rows=tile_rows,
        needs_mask=bool(needs_mask),
    )

    # Same VMEM model as _pick_tile_rows: double-buffered inputs + f32
    # temporaries + small headroom, capped at 85% of physical capacity.
    vmem_limit = (4 * tile_rows * c * itemsize      # 2 inputs x 2 buffers
                  + 6 * tile_rows * c * 4           # f32 temporaries in the body
                  + (2 << 20))                      # output blocks + headroom
    vmem_limit = int(min(max(vmem_limit, 32 << 20), int(vmem_cap * 0.85)))

    partials = pl.pallas_call(
        kernel,
        out_shape=jax.ShapeDtypeStruct((num_tiles * 8, 128), jnp.float32),
        grid_spec=pltpu.PrefetchScalarGridSpec(
            num_scalar_prefetch=0,
            grid=(num_tiles,),
            in_specs=[
                pl.BlockSpec((tile_rows, c), lambda i: (i, 0)),
                pl.BlockSpec((tile_rows, c), lambda i: (i, 0)),
            ],
            out_specs=pl.BlockSpec((8, 128), lambda i: (i, 0)),
        ),
        compiler_params=pltpu.CompilerParams(
            dimension_semantics=("parallel",),   # independent tiles -> 2 TCs on v7x
            vmem_limit_bytes=vmem_limit,
        ),
    )(logits_q, logits_k)

    tile_sums = partials[::8, 0]                   # one scalar per grid step
    return -jnp.sum(tile_sums) / jnp.float32(n)


def _ressl_loss_ref(logits_q, logits_k, t_student=0.1, t_teacher=0.04):
    p_k = jax.nn.softmax(logits_k.astype(jnp.float32) / t_teacher, axis=1)
    log_p_q = jax.nn.log_softmax(logits_q.astype(jnp.float32) / t_student, axis=1)
    return -jnp.sum(p_k * log_p_q, axis=1).mean()


if __name__ == "__main__":
    key = jax.random.PRNGKey(0)
    kq, kk = jax.random.split(key)

    # Case 1: small, single-tile, f32.
    n1, c1 = 16, 32
    q1 = jax.random.normal(kq, (n1, c1), dtype=jnp.float32)
    k1 = jax.random.normal(kk, (n1, c1), dtype=jnp.float32)
    loss1 = ressl_loss(q1, k1)
    jax.block_until_ready(loss1)
    ref1 = _ressl_loss_ref(q1, k1)
    assert jnp.allclose(loss1, ref1, rtol=1e-5, atol=1e-5), (loss1, ref1)

    # Case 2: ragged batch, multiple tiles -> exercises the parallel grid,
    # per-tile partial sums and the tail-row masking path.
    n2, c2 = 40, 256
    q2 = jax.random.normal(kq, (n2, c2), dtype=jnp.float32)
    k2 = jax.random.normal(kk, (n2, c2), dtype=jnp.float32)
    loss2 = ressl_loss(q2, k2, tile_rows=16)
    jax.block_until_ready(loss2)
    ref2 = _ressl_loss_ref(q2, k2)
    assert jnp.allclose(loss2, ref2, rtol=1e-5, atol=1e-5), (loss2, ref2)

    # Case 3: bf16 inputs (halves HBM traffic; max/sub run in bf16, the rest
    # of the softmax math is f32 in-kernel).
    loss3 = ressl_loss(q2.astype(jnp.bfloat16), k2.astype(jnp.bfloat16),
                       tile_rows=16)
    jax.block_until_ready(loss3)
    assert jnp.allclose(loss3, ref2, rtol=2e-2, atol=2e-2), (loss3, ref2)

    print("KERNEL_OK")
</pallas_src>

<mosaic_0001>
module attributes {stable_mosaic.version = 11 : i64} {
  func.func @_ressl_kernel(%arg0: i32, %arg1: memref<16x32xf32, #tpu.memory_space<vmem>>, %arg2: memref<16x32xf32, #tpu.memory_space<vmem>>, %arg3: memref<8x128xf32, #tpu.memory_space<vmem>>) attributes {dimension_semantics = [#tpu.dimension_semantics<parallel>], iteration_bounds = array<i64: 1>, scalar_prefetch = 0 : i64, scratch_operands = 0 : i64, tpu.core_type = #tpu.core_type<tc>, window_params = [{transform_indices = @transform_0, window_bounds = array<i64: 16, 32>}, {transform_indices = @transform_1, window_bounds = array<i64: 16, 32>}, {transform_indices = @transform_2, window_bounds = array<i64: 8, 128>}]} {
    %c0 = arith.constant 0 : index
    %c0_0 = arith.constant 0 : index
    %0 = vector.load %arg1[%c0, %c0_0] : memref<16x32xf32, #tpu.memory_space<vmem>>, vector<16x32xf32>
    %c0_1 = arith.constant 0 : index
    %c0_2 = arith.constant 0 : index
    %1 = vector.load %arg2[%c0_1, %c0_2] : memref<16x32xf32, #tpu.memory_space<vmem>>, vector<16x32xf32>
    %cst = arith.constant dense<0xFF800000> : vector<16xf32>
    %2 = vector.multi_reduction <maximumf>, %0, %cst [1] : vector<16x32xf32> to vector<16xf32>
    %3 = vector.shape_cast %2 : vector<16xf32> to vector<16x1xf32>
    %4 = vector.broadcast %3 : vector<16x1xf32> to vector<16x32xf32>
    %5 = arith.subf %0, %4 : vector<16x32xf32>
    %cst_3 = arith.constant 1.000000e+01 : f32
    %6 = vector.broadcast %cst_3 : f32 to vector<16x32xf32>
    %7 = arith.mulf %5, %6 : vector<16x32xf32>
    %cst_4 = arith.constant dense<0xFF800000> : vector<16xf32>
    %8 = vector.multi_reduction <maximumf>, %1, %cst_4 [1] : vector<16x32xf32> to vector<16xf32>
    %9 = vector.shape_cast %8 : vector<16xf32> to vector<16x1xf32>
    %10 = vector.broadcast %9 : vector<16x1xf32> to vector<16x32xf32>
    %11 = arith.subf %1, %10 : vector<16x32xf32>
    %cst_5 = arith.constant 2.500000e+01 : f32
    %12 = vector.broadcast %cst_5 : f32 to vector<16x32xf32>
    %13 = arith.mulf %11, %12 : vector<16x32xf32>
    %14 = math.exp %7 : vector<16x32xf32>
    %cst_6 = arith.constant dense<0.000000e+00> : vector<16xf32>
    %15 = vector.multi_reduction <add>, %14, %cst_6 [1] : vector<16x32xf32> to vector<16xf32>
    %16 = vector.shape_cast %15 : vector<16xf32> to vector<16x1xf32>
    %17 = math.log %16 : vector<16x1xf32>
    %18 = vector.broadcast %17 : vector<16x1xf32> to vector<16x32xf32>
    %19 = arith.subf %7, %18 : vector<16x32xf32>
    %20 = math.exp %13 : vector<16x32xf32>
    %cst_7 = arith.constant dense<0.000000e+00> : vector<16xf32>
    %21 = vector.multi_reduction <add>, %20, %cst_7 [1] : vector<16x32xf32> to vector<16xf32>
    %22 = vector.shape_cast %21 : vector<16xf32> to vector<16x1xf32>
    %23 = arith.mulf %20, %19 : vector<16x32xf32>
    %cst_8 = arith.constant dense<0.000000e+00> : vector<16xf32>
    %24 = vector.multi_reduction <add>, %23, %cst_8 [1] : vector<16x32xf32> to vector<16xf32>
    %25 = vector.shape_cast %24 : vector<16xf32> to vector<16x1xf32>
    %26 = tpu.reciprocal %22 : vector<16x1xf32> -> vector<16x1xf32>
    %27 = arith.mulf %25, %26 : vector<16x1xf32>
    %cst_9 = arith.constant dense<0.000000e+00> : vector<1xf32>
    %28 = vector.multi_reduction <add>, %27, %cst_9 [0] : vector<16x1xf32> to vector<1xf32>
    %29 = vector.shape_cast %28 : vector<1xf32> to vector<1x1xf32>
    %30 = vector.shape_cast %29 : vector<1x1xf32> to vector<1x1xf32>
    %31 = vector.broadcast %30 : vector<1x1xf32> to vector<8x128xf32>
    %c0_10 = arith.constant 0 : index
    %c0_11 = arith.constant 0 : index
    %32 = vector.load %arg3[%c0_10, %c0_11] : memref<8x128xf32, #tpu.memory_space<vmem>>, vector<8x128xf32>
    tpu.vector_store %arg3[%c0_10, %c0_11], %31 {strides = array<i32>} : memref<8x128xf32, #tpu.memory_space<vmem>>, vector<8x128xf32>,
    return
  }
  func.func @transform_0(%arg0: i32) -> (i32, i32) {
    %c0_i32 = arith.constant 0 : i32
    %c0_i32_0 = arith.constant 0 : i32
    return %arg0, %c0_i32 : i32, i32
  }
  func.func @transform_1(%arg0: i32) -> (i32, i32) {
    %c0_i32 = arith.constant 0 : i32
    %c0_i32_0 = arith.constant 0 : i32
    return %arg0, %c0_i32 : i32, i32
  }
  func.func @transform_2(%arg0: i32) -> (i32, i32) {
    %c0_i32 = arith.constant 0 : i32
    %c0_i32_0 = arith.constant 0 : i32
    return %arg0, %c0_i32 : i32, i32
  }
}

</mosaic_0001>

<bundles_post_ra>
// kernel: tpu_custom_call.1
= control target key start
LH: loop header
LB: loop body
LE: loop exit
PB: predicated region body
PF: predicated region fallthrough
CT: control target
= control target key end

     0   :  { %7 = vsyncpa [#allocation3], 0  ;;  %s297_s0 = inlined_call_operand.hbm [shape: f32[16,32], index: 0, kind: input, shape index: {}]   ;;  %s298_s1 = inlined_call_operand.hbm [shape: f32[16,32], index: 1, kind: input, shape index: {}]   ;;  %s299_s2 = inlined_call_operand.hbm [shape: f32[8,128], index: 2, kind: output, shape index: {}]  }
   0x1   :  { %8 = vsyncpa [#allocation6], 0 }
   0x2   :  { %9 = vsyncpa [#allocation4], 0  ;;  %s14_s11 = sshll.u32 %s297_s0, 4  ;;  %s258_s12 = smov [#allocation2]   ;;  %s15_s11 = int_to_ptr.hbm [resolvable:$true] %s14_s11 }
   0x3   :  { %s16_s13 = sshll.u32 %s258_s12, 4  ;;  %s27_s16 = sshll.u32 %s298_s1, 4  ;;  %s17_s13 = int_to_ptr.vmem [resolvable:$true] %s16_s13  ;;  %s28_s16 = int_to_ptr.hbm [resolvable:$true] %s27_s16 }
   0x4   :  { %s259_s17 = smov 128   ;;  %s260_s18 = smov 8  }
   0x5   :  { %22 = dma.hbm_to_vmem [thread:$0]  %s15_s11, 256, %s17_s13, [#allocation3], %s259_s17, %s259_s17, %s260_s18  }
   0x6   :  { %s261_s19 = smov [#allocation5]  }
   0x7   :  { %s29_s20 = sshll.u32 %s261_s19, 4  ;;  %s30_s20 = int_to_ptr.vmem [resolvable:$true] %s29_s20 }
   0x8   :  { %35 = dma.hbm_to_vmem [thread:$0]  %s28_s16, 256, %s30_s20, [#allocation6], %s259_s17, %s259_s17, %s260_s18  }
   0x9   :  { %252 = dma.done.wait [#allocation3], 256  }
   0xa   :  { %253 = vsyncadd [#allocation3], 4294967040 }
   0xb   :  { %254 = dma.done.wait [#allocation6], 256  }
   0xc   :  { %255 = vsyncadd [#allocation6], 4294967040  ;;  %vm48_vm0 = vcmask 261120   ;;  %v44_v0 = vld [vmem:[#allocation2] sm:$0xff]  ;;  %v46_v1 = vld [vmem:[#allocation5] sm:$0xff]  ;;  %s262_s0 = smov [#allocation7]  }
   0xd   :  { %v49_v2 = vsel %vm48_vm0, %v44_v0, -inf  ;;  %v59_v3 = vsel %vm48_vm0, %v46_v1, -inf  ;;  %v45_v4 = vld [vmem:[#allocation2 + $0x8] sm:$0xff]  ;;  %v47_v5 = vld [vmem:[#allocation5 + $0x8] sm:$0xff]  ;;  %s146_s1 = sshll.u32 %s262_s0, 4  ;;  %s148_s23 = sshll.u32 %s299_s2, 4  ;;  %s147_s1 = int_to_ptr.vmem [resolvable:$true] %s146_s1  ;;  %s149_s23 = int_to_ptr.hbm [resolvable:$true] %s148_s23 }
   0xe   :  { %50 = vmax.xlane.f32.xlu0 %v49_v2  ;;  %60 = vmax.xlane.f32.xlu1 %v59_v3  ;;  %v52_v6 = vsel %vm48_vm0, %v45_v4, -inf  ;;  %v62_v7 = vsel %vm48_vm0, %v47_v5, -inf }
  0x16   :  { %53 = vmax.xlane.f32.xlu0 %v52_v6  ;;  %63 = vmax.xlane.f32.xlu1 %v62_v7 }
  0x81   :  { %v51_v8 = vpop.xlane.xlu0 %50  ;;  %v61_v9 = vpop.xlane.xlu1 %60 }
  0x82   :  { %v55_v10 = vsub.f32 %v44_v0, %v51_v8  ;;  %v65_v11 = vsub.f32 %v46_v1, %v61_v9 }
  0x84   :  { %v57_v12 = vmul.f32 10.0, %v55_v10  ;;  %v67_v13 = vmul.f32 25.0, %v65_v11 }
  0x86   :  { %v69_v14 = vmul.f32 1.442695, %v57_v12  ;;  %v85_v15 = vmul.f32 1.442695, %v67_v13 }
  0x88   :  { %164 = vpow2.f32 %v69_v14 }
  0x89   :  { %v54_v16 = vpop.xlane.xlu0 %53  ;;  %166 = vpow2.f32 %v85_v15  ;;  %v64_v17 = vpop.xlane.xlu1 %63 }
  0x8a   :  { %v56_v18 = vsub.f32 %v45_v4, %v54_v16  ;;  %v66_v19 = vsub.f32 %v47_v5, %v64_v17 }
  0x8c   :  { %v58_v20 = vmul.f32 10.0, %v56_v18  ;;  %v68_v21 = vmul.f32 25.0, %v66_v19 }
  0x8e   :  { %v165_v22 = vpop.eup %164  ;;  %v71_v23 = vmul.f32 1.442695, %v58_v20  ;;  %v87_v24 = vmul.f32 1.442695, %v68_v21 }
  0x8f   :  { %v167_v25 = vpop.eup %166  ;;  %v73_v26 = vsel %vm48_vm0, %v165_v22, 0.0 }
  0x90   :  { %168 = vpow2.f32 %v71_v23  ;;  %74 = vadd.xlane.f32.xlu2 %v73_v26  ;;  %v89_v27 = vsel %vm48_vm0, %v167_v25, 0.0 }
  0x91   :  { %170 = vpow2.f32 %v87_v24  ;;  %90 = vadd.xlane.f32.xlu0 %v89_v27 }
  0x96   :  { %v169_v28 = vpop.eup %168 }
  0x97   :  { %v171_v29 = vpop.eup %170  ;;  %v76_v30 = vsel %vm48_vm0, %v169_v28, 0.0 }
  0x98   :  { %77 = vadd.xlane.f32.xlu2 %v76_v30  ;;  %v92_v31 = vsel %vm48_vm0, %v171_v29, 0.0 }
  0x99   :  { %93 = vadd.xlane.f32.xlu1 %v92_v31 }
 0x103   :  { %v75_v32 = vpop.xlane.xlu2 %74 }
 0x104   :  { %172 = vlog2.f32 %v75_v32  ;;  %v91_v44 = vpop.xlane.xlu0 %90 }
 0x105   :  { %vm108_vm1 = vweird.f32 %v91_v44  ;;  %v114_v55 = vand.u32 2147483648, %v91_v44  ;;  %v112_v57 = vand.u32 2147483647, %v91_v44 }
 0x107   :  { %v115_v60 = vor.u32 1.1754944e-38, %v114_v55  ;;  %vm113_vm7 = vcmp.eq.f32.partialorder %v112_v57, 8.507059e+37 }
 0x10a   :  { %v173_v33 = vpop.eup %172 }
 0x10b   :  { %v80_v34 = vmul.f32 0.6931472, %v173_v33  ;;  %v78_v35 = vpop.xlane.xlu2 %77 }
 0x10c   :  { %174 = vlog2.f32 %v78_v35  ;;  %v94_v45 = vpop.xlane.xlu1 %93 }
 0x10d   :  { %v83_v36 = vsub.f32 %v57_v12, %v80_v34  ;;  %176 = vrcp.f32 %v91_v44  ;;  %vm122_vm3 = vweird.f32 %v94_v45  ;;  %v128_v54 = vand.u32 2147483648, %v94_v45 }
 0x10e   :  { %178 = vrcp.f32 %v94_v45  ;;  %v126_v59 = vand.u32 2147483647, %v94_v45 }
 0x10f   :  { %v95_v37 = vmul.f32 %v167_v25, %v83_v36  ;;  %v129_v61 = vor.u32 1.1754944e-38, %v128_v54 }
 0x110   :  { %vm127_vm8 = vcmp.eq.f32.partialorder %v126_v59, 8.507059e+37 }
 0x111   :  { %v97_v38 = vsel %vm48_vm0, %v95_v37, 0.0 }
 0x112   :  { %v175_v39 = vpop.eup %174  ;;  %98 = vadd.xlane.f32.xlu2 %v97_v38 }
 0x113   :  { %v82_v40 = vmul.f32 0.6931472, %v175_v39  ;;  %v177_v46 = vpop.eup %176 }
 0x114   :  { %v179_v47 = vpop.eup %178  ;;  %v104_v48 = vmul.f32 %v177_v46, %v91_v44  ;;  %vm109_vm2 = vweird.f32 %v177_v46 }
 0x115   :  { %v84_v41 = vsub.f32 %v58_v20, %v82_v40  ;;  %v118_v49 = vmul.f32 %v179_v47, %v94_v45  ;;  %vm123_vm4 = vweird.f32 %v179_v47  ;;  %vm110_vm5 = vmor %vm108_vm1, %vm109_vm2 }
 0x116   :  { %v105_v50 = vsub.f32 1.0, %v104_v48  ;;  %vm124_vm6 = vmor %vm122_vm3, %vm123_vm4 }
 0x117   :  { %v96_v42 = vmul.f32 %v171_v29, %v84_v41  ;;  %v119_v51 = vsub.f32 1.0, %v118_v49 }
 0x118   :  { %v106_v53 = vmul.f32 %v177_v46, %v105_v50 }
 0x119   :  { %v100_v43 = vsel %vm48_vm0, %v96_v42, 0.0  ;;  %v120_v52 = vmul.f32 %v179_v47, %v119_v51 }
 0x11a   :  { %101 = vadd.xlane.f32.xlu0 %v100_v43  ;;  %v107_v56 = vadd.f32 %v177_v46, %v106_v53 }
 0x11b   :  { %v121_v58 = vadd.f32 %v179_v47, %v120_v52 }
 0x11c   :  { %v111_v62 = vsel %vm110_vm5, %v177_v46, %v107_v56 }
 0x11d   :  { %v125_v63 = vsel %vm124_vm6, %v179_v47, %v121_v58  ;;  %v116_v1 = vsel %vm113_vm7, %v115_v60, %v111_v62 }
 0x11e   :  { %v130_v2 = vsel %vm127_vm8, %v129_v61, %v125_v63 }
 0x185   :  { %v99_v0 = vpop.xlane.xlu2 %98 }
 0x186   :  { %v131_v4 = vmul.f32 %v116_v1, %v99_v0 }
 0x18d   :  { %v102_v3 = vpop.xlane.xlu0 %101 }
 0x18e   :  { %v132_v5 = vmul.f32 %v130_v2, %v102_v3 }
 0x190   :  { %v133_v6 = vadd.f32 %v132_v5, %v131_v4 }
 0x192   :  { %v134_v7 = vrot.slane %v133_v6, 4 }
 0x194   :  { %v135_v8 = vadd.f32 %v134_v7, %v133_v6 }
 0x196   :  { %v136_v9 = vrot.slane %v135_v8, 2 }
 0x198   :  { %v137_v10 = vadd.f32 %v136_v9, %v135_v8 }
 0x19a   :  { %v138_v11 = vrot.slane %v137_v10, 1 }
 0x19c   :  { %v139_v12 = vadd.f32 %v138_v11, %v137_v10 }
 0x19e   :  { %140 = vst [vmem:[#allocation7] sm:$0xff] %v139_v12 }
 0x19f   :  { %151 = dma.vmem_to_hbm [thread:$0]  %s147_s1, 128, %s149_s23, [#allocation4]  }
 0x1a0   :  { %256 = dma.done.wait [#allocation4], 128  }
 0x1a1   :  { %257 = vsyncadd [#allocation4], 4294967168 }
 0x1a2   :  { %156 = vsyncpa [#allocation3], 1 }
 0x1a3   :  { %157 = vsyncpa [#allocation6], 1 }
 0x1a4   :  { %158 = vsyncpa [#allocation4], 1 }

</bundles_post_ra>
